<compile_context>
chip_gen: v6e
topology: v6e:2x2x1
jax: 0.10.0
libtpu: 0.0.40
codegen_flags: <defaults>
</compile_context>

<pallas_src>
import math

import jax
import jax.numpy as jnp
from jax.experimental import pallas as pl
from jax.experimental.pallas import tpu as pltpu  # noqa: F401  (see TODO above)


def _make_lstm_kernel(num_layers, hidden):
    """Build the fused kernel for a static (num_layers, hidden)."""
    L, H = num_layers, hidden

    def kernel(x_ref, h0_ref, c0_ref, *rest):
        # rest = (w_ih_0..w_ih_{L-1}, w_hh_0..w_hh_{L-1}, b_0..b_{L-1}, hn, cn)
        w_refs = rest[0:L]            # (in_l, 4H) bf16  -- gate order i|f|g|o
        u_refs = rest[L:2 * L]        # (H,    4H) bf16
        b_refs = rest[2 * L:3 * L]    # (1,    4H) f32   -- b_ih + b_hh
        hn_ref = rest[3 * L]          # (L, B, H) f32
        cn_ref = rest[3 * L + 1]      # (L, B, H) f32

        inp = x_ref[...].astype(jnp.bfloat16)        # (B, in_dim) layer-0 input

        # L is a small static int: fully unrolled, no grid-step overhead.
        for l in range(L):
            h = h0_ref[l].astype(jnp.bfloat16)       # (B, H) bf16 for the MXU
            c = c0_ref[l]                            # (B, H) f32

            # Two lane-dense MXU matmuls + one bias row per layer.
            gates = (jnp.dot(inp, w_refs[l][...],
                             preferred_element_type=jnp.float32)
                     + jnp.dot(h, u_refs[l][...],
                               preferred_element_type=jnp.float32)
                     + b_refs[l][...])               # (B, 4H) f32

            # PyTorch gate order: i, f, g, o (static lane slices of one tile).
            i_g = jax.nn.sigmoid(gates[:, 0 * H:1 * H])
            f_g = jax.nn.sigmoid(gates[:, 1 * H:2 * H])
            g_g = jnp.tanh(gates[:, 2 * H:3 * H])
            o_g = jax.nn.sigmoid(gates[:, 3 * H:4 * H])

            # Recurrence in f32 (v5e-friendly; EUP handles tanh/sigmoid).
            c_new = f_g * c + i_g * g_g
            h_new = o_g * jnp.tanh(c_new)

            hn_ref[l] = h_new
            cn_ref[l] = c_new
            inp = h_new.astype(jnp.bfloat16)         # next layer's input

    return kernel


@jax.jit
def _lstm_forward(x, h0, c0, w_ihs, w_hhs, biases):
    """x: (B, in_dim) f32; h0/c0: (L, B, H) f32; per-layer weight tuples."""
    L, B, H = h0.shape
    out_sds = jax.ShapeDtypeStruct((L, B, H), jnp.float32)
    # Grid-less call: every input/output is a full-array VMEM block
    # (block_shape == array shape, so the (8,128) divisibility rule is moot).
    h_n, c_n = pl.pallas_call(
        _make_lstm_kernel(L, H),
        out_shape=(out_sds, out_sds),
    )(x, h0, c0, *w_ihs, *w_hhs, *biases)
    # nn.LSTM output at seq_len == 1 is the last layer's hidden state.
    return h_n[L - 1], h_n, c_n


class LSTMheadPallas:
    """JAX/Pallas re-implementation of LSTMhead (num_layers layers, seq len 1)."""

    def __init__(self, in_dim, out_dim, num_layers=1, key=None,
                 param_dtype=jnp.bfloat16):
        self.in_dim = in_dim
        self.hidden_size = out_dim
        self.num_layers = num_layers
        self.hidden_shape = (2, 1, 1, out_dim)
        if key is None:
            key = jax.random.PRNGKey(42)
        H = out_dim
        bound = 1.0 / math.sqrt(H)

        w_ihs, w_hhs, biases = [], [], []
        for layer in range(num_layers):
            layer_in = in_dim if layer == 0 else out_dim
            key, k1, k2, k3, k4 = jax.random.split(key, 5)
            # PyTorch shapes: weight_ih (4H, layer_in), weight_hh (4H, H),
            # bias_ih / bias_hh (4H,).  Init: U(-1/sqrt(H), 1/sqrt(H)).
            # Row blocks [0:H]=i, [H:2H]=f, [2H:3H]=g, [3H:4H]=o.
            w_ih = jax.random.uniform(k1, (4 * H, layer_in),
                                      jnp.float32, -bound, bound)
            w_hh = jax.random.uniform(k2, (4 * H, H),
                                      jnp.float32, -bound, bound)
            b_ih = jax.random.uniform(k3, (4 * H,), jnp.float32, -bound, bound)
            b_hh = jax.random.uniform(k4, (4 * H,), jnp.float32, -bound, bound)

            # Transpose once: columns are already in i|f|g|o order along lanes,
            # giving a lane-dense (B, 4H) pre-activation from one matmul each.
            w_ihs.append(w_ih.T.astype(param_dtype))           # (layer_in, 4H)
            w_hhs.append(w_hh.T.astype(param_dtype))           # (H, 4H)
            biases.append((b_ih + b_hh).reshape(1, 4 * H))     # (1, 4H) f32

        # Weights bf16 (halve HBM/VMEM footprint; f32 accumulation in-kernel),
        # bias in f32.
        self.w_ihs = tuple(w_ihs)
        self.w_hhs = tuple(w_hhs)
        self.biases = tuple(biases)

    def init_hidden(self, batch=1):
        z = jnp.zeros((self.num_layers, batch, self.hidden_size), jnp.float32)
        return (z, z)

    def forward(self, x, hidden_state):
        """x: (batch, in_dim); hidden_state = (h0, c0), each (L, batch, H)."""
        h0, c0 = hidden_state
        y, h_n, c_n = _lstm_forward(
            x, h0.astype(jnp.float32), c0.astype(jnp.float32),
            self.w_ihs, self.w_hhs, self.biases)
        # PyTorch: lstm output is (seq=1, batch, H); the module returns x[0].
        return y, (h_n, c_n)


def _reference_forward(model, x, hidden_state):
    """Pure-JAX reference with identical math/precision (sanity check)."""
    h0, c0 = hidden_state
    H = model.hidden_size
    inp = x.astype(jnp.bfloat16)
    hs, cs = [], []
    h_new = None
    for l in range(model.num_layers):
        h = h0[l]
        c = c0[l]
        gates = (jnp.dot(inp, model.w_ihs[l],
                         preferred_element_type=jnp.float32)
                 + jnp.dot(h.astype(jnp.bfloat16), model.w_hhs[l],
                           preferred_element_type=jnp.float32)
                 + model.biases[l])
        i_g = jax.nn.sigmoid(gates[:, 0 * H:1 * H])
        f_g = jax.nn.sigmoid(gates[:, 1 * H:2 * H])
        g_g = jnp.tanh(gates[:, 2 * H:3 * H])
        o_g = jax.nn.sigmoid(gates[:, 3 * H:4 * H])
        c_new = f_g * c + i_g * g_g
        h_new = o_g * jnp.tanh(c_new)
        hs.append(h_new)
        cs.append(c_new)
        inp = h_new.astype(jnp.bfloat16)
    return h_new, (jnp.stack(hs, 0), jnp.stack(cs, 0))


if __name__ == "__main__":
    batch, in_dim, hidden = 2, 16, 32
    key = jax.random.PRNGKey(0)
    kx, kh, kc = jax.random.split(key, 3)
    x = jax.random.normal(kx, (batch, in_dim), jnp.float32)

    for num_layers in (1, 2):
        model = LSTMheadPallas(in_dim, hidden, num_layers=num_layers,
                               key=jax.random.PRNGKey(42))
        h0 = jax.random.normal(kh, (num_layers, batch, hidden), jnp.float32)
        c0 = jax.random.normal(kc, (num_layers, batch, hidden), jnp.float32)

        y, (h_n, c_n) = model.forward(x, (h0, c0))
        y = jax.block_until_ready(y)
        h_n = jax.block_until_ready(h_n)
        c_n = jax.block_until_ready(c_n)

        y_ref, (h_ref, c_ref) = _reference_forward(model, x, (h0, c0))
        assert y.shape == (batch, hidden)
        assert h_n.shape == (num_layers, batch, hidden)
        assert c_n.shape == (num_layers, batch, hidden)
        assert jnp.allclose(y, y_ref, atol=1e-4, rtol=1e-4)
        assert jnp.allclose(h_n, h_ref, atol=1e-4, rtol=1e-4)
        assert jnp.allclose(c_n, c_ref, atol=1e-4, rtol=1e-4)
        assert jnp.allclose(y, h_n[-1])

    print("KERNEL_OK")
</pallas_src>

<mosaic_0001>
module attributes {stable_mosaic.version = 11 : i64} {
  func.func @kernel(%arg0: memref<2x16xf32, #tpu.memory_space<vmem>>, %arg1: memref<1x2x32xf32, #tpu.memory_space<vmem>>, %arg2: memref<1x2x32xf32, #tpu.memory_space<vmem>>, %arg3: memref<16x128xbf16, #tpu.memory_space<vmem>>, %arg4: memref<32x128xbf16, #tpu.memory_space<vmem>>, %arg5: memref<1x128xf32, #tpu.memory_space<vmem>>, %arg6: memref<1x2x32xf32, #tpu.memory_space<vmem>>, %arg7: memref<1x2x32xf32, #tpu.memory_space<vmem>>) attributes {dimension_semantics = [], scalar_prefetch = 0 : i64, scratch_operands = 0 : i64, tpu.core_type = #tpu.core_type<tc>} {
    %c0 = arith.constant 0 : index
    %c0_0 = arith.constant 0 : index
    %0 = vector.load %arg0[%c0, %c0_0] : memref<2x16xf32, #tpu.memory_space<vmem>>, vector<2x16xf32>
    %1 = arith.truncf %0 : vector<2x16xf32> to vector<2x16xbf16>
    %c0_1 = arith.constant 0 : index
    %c0_2 = arith.constant 0 : index
    %c0_3 = arith.constant 0 : index
    %2 = vector.load %arg1[%c0_1, %c0_2, %c0_3] : memref<1x2x32xf32, #tpu.memory_space<vmem>>, vector<1x2x32xf32>
    %3 = vector.shape_cast %2 : vector<1x2x32xf32> to vector<2x32xf32>
    %4 = arith.truncf %3 : vector<2x32xf32> to vector<2x32xbf16>
    %c0_4 = arith.constant 0 : index
    %c0_5 = arith.constant 0 : index
    %c0_6 = arith.constant 0 : index
    %5 = vector.load %arg2[%c0_4, %c0_5, %c0_6] : memref<1x2x32xf32, #tpu.memory_space<vmem>>, vector<1x2x32xf32>
    %6 = vector.shape_cast %5 : vector<1x2x32xf32> to vector<2x32xf32>
    %c0_7 = arith.constant 0 : index
    %c0_8 = arith.constant 0 : index
    %7 = vector.load %arg3[%c0_7, %c0_8] : memref<16x128xbf16, #tpu.memory_space<vmem>>, vector<16x128xbf16>
    %cst = arith.constant dense<0.000000e+00> : vector<2x128xf32>
    %8 = tpu.matmul %1, %7, %cst {dimension_numbers = #tpu.dot_dimension_numbers<[1], [0], [0], [1], [0, 0, 1, 1], [], []>} : vector<2x16xbf16>, vector<16x128xbf16>, vector<2x128xf32> -> vector<2x128xf32>
    %c0_9 = arith.constant 0 : index
    %c0_10 = arith.constant 0 : index
    %9 = vector.load %arg4[%c0_9, %c0_10] : memref<32x128xbf16, #tpu.memory_space<vmem>>, vector<32x128xbf16>
    %cst_11 = arith.constant dense<0.000000e+00> : vector<2x128xf32>
    %10 = tpu.matmul %4, %9, %cst_11 {dimension_numbers = #tpu.dot_dimension_numbers<[1], [0], [0], [1], [0, 0, 1, 1], [], []>} : vector<2x32xbf16>, vector<32x128xbf16>, vector<2x128xf32> -> vector<2x128xf32>
    %11 = arith.addf %8, %10 : vector<2x128xf32>
    %c0_12 = arith.constant 0 : index
    %c0_13 = arith.constant 0 : index
    %12 = vector.load %arg5[%c0_12, %c0_13] : memref<1x128xf32, #tpu.memory_space<vmem>>, vector<1x128xf32>
    %13 = vector.broadcast %12 : vector<1x128xf32> to vector<2x128xf32>
    %14 = arith.addf %11, %13 : vector<2x128xf32>
    %15 = vector.extract_strided_slice %14 {offsets = [0, 0], sizes = [2, 32], strides = [1, 1]} : vector<2x128xf32> to vector<2x32xf32>
    %16 = arith.negf %15 : vector<2x32xf32>
    %17 = math.exp %16 : vector<2x32xf32>
    %cst_14 = arith.constant 1.000000e+00 : f32
    %18 = vector.broadcast %cst_14 : f32 to vector<2x32xf32>
    %19 = arith.addf %18, %17 : vector<2x32xf32>
    %20 = arith.divf %18, %19 : vector<2x32xf32>
    %21 = vector.extract_strided_slice %14 {offsets = [0, 32], sizes = [2, 32], strides = [1, 1]} : vector<2x128xf32> to vector<2x32xf32>
    %22 = arith.negf %21 : vector<2x32xf32>
    %23 = math.exp %22 : vector<2x32xf32>
    %cst_15 = arith.constant 1.000000e+00 : f32
    %24 = vector.broadcast %cst_15 : f32 to vector<2x32xf32>
    %25 = arith.addf %24, %23 : vector<2x32xf32>
    %26 = arith.divf %24, %25 : vector<2x32xf32>
    %27 = vector.extract_strided_slice %14 {offsets = [0, 64], sizes = [2, 32], strides = [1, 1]} : vector<2x128xf32> to vector<2x32xf32>
    %28 = math.tanh %27 : vector<2x32xf32>
    %29 = vector.extract_strided_slice %14 {offsets = [0, 96], sizes = [2, 32], strides = [1, 1]} : vector<2x128xf32> to vector<2x32xf32>
    %30 = arith.negf %29 : vector<2x32xf32>
    %31 = math.exp %30 : vector<2x32xf32>
    %cst_16 = arith.constant 1.000000e+00 : f32
    %32 = vector.broadcast %cst_16 : f32 to vector<2x32xf32>
    %33 = arith.addf %32, %31 : vector<2x32xf32>
    %34 = arith.divf %32, %33 : vector<2x32xf32>
    %35 = arith.mulf %26, %6 : vector<2x32xf32>
    %36 = arith.mulf %20, %28 : vector<2x32xf32>
    %37 = arith.addf %35, %36 : vector<2x32xf32>
    %38 = math.tanh %37 : vector<2x32xf32>
    %39 = arith.mulf %34, %38 : vector<2x32xf32>
    %c0_17 = arith.constant 0 : index
    %c0_18 = arith.constant 0 : index
    %c0_19 = arith.constant 0 : index
    %40 = vector.load %arg6[%c0_17, %c0_18, %c0_19] : memref<1x2x32xf32, #tpu.memory_space<vmem>>, vector<1x2x32xf32>
    %41 = vector.shape_cast %40 : vector<1x2x32xf32> to vector<2x32xf32>
    %42 = vector.shape_cast %39 : vector<2x32xf32> to vector<1x2x32xf32>
    tpu.vector_store %arg6[%c0_17, %c0_18, %c0_19], %42 {strides = array<i32>} : memref<1x2x32xf32, #tpu.memory_space<vmem>>, vector<1x2x32xf32>,
    %c0_20 = arith.constant 0 : index
    %c0_21 = arith.constant 0 : index
    %c0_22 = arith.constant 0 : index
    %43 = vector.load %arg7[%c0_20, %c0_21, %c0_22] : memref<1x2x32xf32, #tpu.memory_space<vmem>>, vector<1x2x32xf32>
    %44 = vector.shape_cast %43 : vector<1x2x32xf32> to vector<2x32xf32>
    %45 = vector.shape_cast %37 : vector<2x32xf32> to vector<1x2x32xf32>
    tpu.vector_store %arg7[%c0_20, %c0_21, %c0_22], %45 {strides = array<i32>} : memref<1x2x32xf32, #tpu.memory_space<vmem>>, vector<1x2x32xf32>,
    return
  }
}

</mosaic_0001>

<bundles_post_ra>
// kernel: _lstm_forward.1
= control target key start
LH: loop header
LB: loop body
LE: loop exit
PB: predicated region body
PF: predicated region fallthrough
CT: control target
= control target key end

     0   :  { %13 = vsyncpa [#allocation3], 0  ;;  %s505_s0 = inlined_call_operand.hbm [shape: f32[2,16], index: 0, kind: input, shape index: {}]   ;;  %s506_s1 = inlined_call_operand.hbm [shape: f32[1,2,32], index: 1, kind: input, shape index: {}]   ;;  %s507_s2 = inlined_call_operand.vmem [shape: f32[1,2,32], index: 2, kind: input, shape index: {}]   ;;  %s508_s3 = inlined_call_operand.hbm [shape: bf16[16,128], index: 3, kind: input, shape index: {}]   ;;  %s509_s4 = inlined_call_operand.hbm [shape: bf16[32,128], index: 4, kind: input, shape index: {}]   ;;  %s510_s5 = inlined_call_operand.vmem [shape: f32[1,128], index: 5, kind: input, shape index: {}]   ;;  %s511_s6 = inlined_call_operand.vmem [shape: f32[1,2,32], index: 6, kind: output, shape index: {0}]   ;;  %s512_s7 = inlined_call_operand.hbm [shape: f32[1,2,32], index: 7, kind: output, shape index: {1}]  }
   0x1   :  { %14 = vsyncpa [#allocation6], 0 }
   0x2   :  { %15 = vsyncpa [#allocation9], 0 }
   0x3   :  { %16 = vsyncpa [#allocation4], 0  ;;  %s419_s24 = smov [#allocation5]   ;;  %s420_s26 = smov [#allocation2]  }
   0x4   :  { %s33_s25 = sshll.u32 %s419_s24, 4  ;;  %s23_s27 = sshll.u32 %s420_s26, 4  ;;  %s34_s25 = int_to_ptr.vmem [resolvable:$true] %s33_s25  ;;  %s24_s27 = int_to_ptr.vmem [resolvable:$true] %s23_s27 }
   0x5   :  { %s319_s28 = scalar_lea.vmem %s34_s25, 32  ;;  %p324_p1 = scmp.lt.s32.totalorder %s34_s25, %s34_s25 }
   0x6   :  { %p320_p0 = scmp.ne.s32.totalorder %s34_s25, %s319_s28  ;;  %p325_p2 = scmp.lt.s32.totalorder %s319_s28, %s319_s28 }
   0x8   :  { %p326_p3 = por %p325_p2, %p324_p1 }
   0xa   :  { %p327_p4 = pnand %p326_p3, %p320_p0 }
   0xc   :  { %330 = shalt.err (!%p327_p4)
}
   0xd   :  { %36 = dma.hbm_to_vmem [thread:$0]  %s506_s1, 32, %s34_s25, [#allocation6]  }
   0xe   :  { %s339_s8 = scalar_lea.vmem %s24_s27, 32  ;;  %p344_p6 = scmp.lt.s32.totalorder %s24_s27, %s24_s27 }
   0xf   :  { %p340_p5 = scmp.ne.s32.totalorder %s24_s27, %s339_s8  ;;  %p345_p7 = scmp.lt.s32.totalorder %s339_s8, %s339_s8 }
  0x11   :  { %p346_p8 = por %p345_p7, %p344_p6 }
  0x13   :  { %p347_p9 = pnand %p346_p8, %p340_p5 }
  0x15   :  { %350 = shalt.err (!%p347_p9)
}
  0x16   :  { %26 = dma.hbm_to_vmem [thread:$0]  %s505_s0, 32, %s24_s27, [#allocation3]  }
  0x17   :  { %s421_s11 = smov [#allocation7]  }
  0x18   :  { %s44_s12 = sshll.u32 %s421_s11, 4  ;;  %s45_s12 = int_to_ptr.vmem [resolvable:$true] %s44_s12 }
  0x19   :  { %s359_s13 = scalar_lea.vmem %s45_s12, 128  ;;  %p364_p11 = scmp.lt.s32.totalorder %s45_s12, %s45_s12 }
  0x1a   :  { %p360_p10 = scmp.ne.s32.totalorder %s45_s12, %s359_s13  ;;  %p365_p12 = scmp.lt.s32.totalorder %s359_s13, %s359_s13 }
  0x1c   :  { %p366_p13 = por %p365_p12, %p364_p11 }
  0x1e   :  { %p367_p0 = pnand %p366_p13, %p360_p10 }
  0x20   :  { %370 = shalt.err (!%p367_p0)
}
  0x21   :  { %s422_s1 = smov 64   ;;  %s423_s14 = smov 4  }
  0x22   :  { %50 = dma.hbm_to_vmem [thread:$0]  %s508_s3, 128, %s45_s12, [#allocation6], %s422_s1, %s422_s1, %s423_s14  }
  0x23   :  { %s424_s17 = smov [#allocation8]  }
  0x24   :  { %s56_s0 = sshll.u32 %s424_s17, 4  ;;  %s57_s0 = int_to_ptr.vmem [resolvable:$true] %s56_s0 }
  0x25   :  { %s379_s18 = scalar_lea.vmem %s57_s0, 256  ;;  %p384_p2 = scmp.lt.s32.totalorder %s57_s0, %s57_s0 }
  0x26   :  { %p380_p1 = scmp.ne.s32.totalorder %s57_s0, %s379_s18  ;;  %p385_p3 = scmp.lt.s32.totalorder %s379_s18, %s379_s18 }
  0x28   :  { %p386_p4 = por %p385_p3, %p384_p2 }
  0x2a   :  { %p387_p5 = pnand %p386_p4, %p380_p1 }
  0x2c   :  { %390 = shalt.err (!%p387_p5)
}
  0x2d   :  { %62 = dma.hbm_to_vmem [thread:$0]  %s509_s4, 256, %s57_s0, [#allocation9], %s422_s1, %s422_s1, %s423_s14  }
  0x2e   :  { %411 = dma.done.wait [#allocation3], 32  }
  0x2f   :  { %412 = vsyncadd [#allocation3], 4294967264 }
  0x30   :  { %413 = dma.done.wait [#allocation6], 160  }
  0x31   :  { %414 = vsyncadd [#allocation6], 4294967136 }
  0x32   :  { %415 = dma.done.wait [#allocation9], 256  }
  0x33   :  { %416 = vsyncadd [#allocation9], 4294967040  ;;  %v425_v0 = vmov 0.0   ;;  %vm426_vm0 = vmmov 0   ;;  %v300_v1 = vld [vmem:[#allocation8 + $0x8] sm:$0xff]   ;;  %v301_v2 = vld [vmem:[#allocation7] sm:$0xff]  }
  0x34   :  { %275 = vmatprep.subr.bf16.mxu0 %v425_v0  ;;  %283 = vmatprep.subr.bf16.mxu1 %v425_v0  ;;  %v78_v3 = vld [vmem:[#allocation2] sm:$0x3]  ;;  %vm151_vm1 = vcmask 130048   ;;  %v302_v5 = vld [vmem:[#allocation8] sm:$0xff]   ;;  %v80_v6 = vld [vmem:[#allocation5] sm:$0x3] }
  0x35   :  { %285 = vmatprep.mubr.msk.bf16.mxu1 %vm426_vm0, %v425_v0  ;;  %279 = vmatprep.mubr.msk.bf16.mxu0 %vm426_vm0, %v425_v0  ;;  %v79_v4 = vpack.c.bf16 %v78_v3, %v78_v3  ;;  %v81_v7 = vpack.c.bf16 %v80_v6, %v80_v6  ;;  %vm101_vm2 = vcmask 261120   ;;  %v268_v11 = vld [vmem:[%s510_s5] ss:$0 sm:$0xff]  ;;  %s427_s23 = smov 32   ;;  %s428_s5 = smov 96   ;;  %vm235_vm3 = vcmask 254976  }
  0x36   :  { %276 = vmatpush3.bf16.msra.mxu0 %v300_v1  ;;  %284 = vmatpush3.bf16.msra.mxu1 %v301_v2  ;;  %v82_v20 = vld [vmem:[%s507_s2] sm:$0x3]  ;;  %s429_s2 = smov [#allocation10]  }
  0x37   :  { %277 = vmatprep.subr.bf16.mxu0 %v425_v0  ;;  %s250_s24 = sshll.u32 %s429_s2, 4  ;;  %s251_s24 = int_to_ptr.vmem [resolvable:$true] %s250_s24 }
  0x38   :  { %s391_s25 = scalar_lea.vmem %s251_s24, 32  ;;  %p396_p7 = scmp.lt.s32.totalorder %s251_s24, %s251_s24 }
  0x39   :  { %286 = vmatmul.mubr.msk.bf16.vlgmr.msra.gmra.mxu1 %vm151_vm1, %v79_v4  ;;  %p392_p6 = scmp.ne.s32.totalorder %s251_s24, %s391_s25  ;;  %p397_p8 = scmp.lt.s32.totalorder %s391_s25, %s391_s25 }
  0x3a   :  { %278 = vmatpush3.bf16.msra.mxu0 %v302_v5 }
  0x3b   :  { %p398_p9 = por %p397_p8, %p396_p7 }
  0x3d   :  { %280 = vmatmul.mubr.msk.bf16.vlgmr.msra.gmra.mxu0 %vm101_vm2, %v81_v7  ;;  %p399_p10 = pnand %p398_p9, %p392_p6 }
  0xf9   :  { %v189_v8 = vpop.f32.mrf.mxu1 }
  0xfb   :  { %v287_v9 = vpop.f32.mrf.mxu1 }
  0xfd   :  { %v139_v10 = vpop.f32.mrf.mxu0  ;;  %v192_v13 = vpop.f32.mrf.mxu1 }
  0xfe   :  { %v190_v12 = vadd.f32 %v189_v8, %v139_v10 }
  0xff   :  { %v281_v14 = vpop.f32.mrf.mxu0  ;;  %v288_v16 = vpop.f32.mrf.mxu1 }
 0x100   :  { %v202_v15 = vadd.f32 %v268_v11, %v190_v12 }
 0x101   :  { %v142_v17 = vpop.f32.mrf.mxu0 }
 0x102   :  { %303 = vtanh.f32 %v202_v15  ;;  %v269_v21 = vmul.f32 -1.442695, %v202_v15 }
 0x103   :  { %v282_v18 = vpop.f32.mrf.mxu0 }
 0x104   :  { %305 = vpow2.f32 %v269_v21 }
 0x10f   :  { %v304_v19 = vpop.eup %303 }
 0x110   :  { %216 = vrot.lane.b32.xlu0 %v304_v19, %s422_s1 }
 0x111   :  { %v306_v22 = vpop.eup %305 }
 0x112   :  { %v206_v23 = vadd.f32 1.0, %v306_v22 }
 0x114   :  { %211 = vrot.lane.b32.xlu0 %v82_v20, %s427_s23  ;;  %307 = vrcp.f32 %v206_v23 }
 0x121   :  { %v308_v24 = vpop.eup %307 }
 0x182   :  { %v217_v25 = vpop.permute.xlu0 %216 }
 0x183   :  { %v219_v26 = vmul.f32 %v308_v24, %v217_v25 }
 0x185   :  { %221 = vrot.lane.b32.xlu1 %v219_v26, %s427_s23 }
 0x186   :  { %v212_v27 = vpop.permute.xlu0 %211 }
 0x187   :  { %v214_v28 = vmul.f32 %v308_v24, %v212_v27 }
 0x1f7   :  { %v222_v29 = vpop.permute.xlu1 %221 }
 0x1f8   :  { %v224_v30 = vadd.f32 %v222_v29, %v214_v28 }
 0x1fa   :  { %309 = vtanh.f32 %v224_v30  ;;  %238 = vrot.lane.b32.xlu0 %v224_v30, %s428_s5 }
 0x207   :  { %v310_v31 = vpop.eup %309 }
 0x208   :  { %227 = vrot.lane.b32.xlu1 %v310_v31, %s422_s1 }
 0x26c   :  { %v239_v32 = vpop.permute.xlu0 %238 }
 0x26d   :  { %241 = vst.msk [vmem:[#allocation10] sm:$0x3] %vm235_vm3, %v239_v32 }
 0x26e   :  { %402 = shalt.err (!%p399_p10)
}
 0x26f   :  { %253 = dma.vmem_to_hbm [thread:$0]  %s251_s24, 32, %s512_s7, [#allocation4]  }
 0x27a   :  { %v228_v33 = vpop.permute.xlu1 %227 }
 0x27b   :  { %v230_v34 = vmul.f32 %v308_v24, %v228_v33 }
 0x27d   :  { %232 = vrot.lane.b32.xlu1 %v230_v34, %s427_s23 }
 0x2ef   :  { %v233_v35 = vpop.permute.xlu1 %232 }
 0x2f0   :  { %236 = vst.msk [vmem:[%s511_s6] sm:$0x3] %vm235_vm3, %v233_v35 }
 0x2f1   :  { %417 = dma.done.wait [#allocation4], 32  }
 0x2f2   :  { %418 = vsyncadd [#allocation4], 4294967264 }
 0x2f3   :  { %259 = vsyncpa [#allocation3], 1 }
 0x2f4   :  { %260 = vsyncpa [#allocation6], 1 }
 0x2f5   :  { %261 = vsyncpa [#allocation9], 1 }
 0x2f6   :  { %262 = vsyncpa [#allocation4], 1 }

</bundles_post_ra>
